<compile_context>
chip_gen: v7x
topology: tpu7x:2x2x1
jax: 0.10.0
libtpu: 0.0.40
codegen_flags: <defaults>
</compile_context>

<pallas_src>
import functools

import numpy as np
import jax
import jax.numpy as jnp
from jax import lax
from jax.experimental import pallas as pl
from jax.experimental.pallas import tpu as pltpu

KSIZES = (3, 5)                    # kernel sizes of the two S2Blocks (pooling == 1)
MAXPAD = (max(KSIZES) - 1) // 2    # 2 -> shared 5x5 tap grid
NTAPS = 2 * MAXPAD + 1
NUM_GROUPS = 2
EPS = 1e-3


def s2_kernel(W, unroll, x_ref, wcat_ref, wdwm_ref, o_ref):
    nb, C2, HW = o_ref.shape
    Cin = x_ref.shape[1]

    # packed constants: loaded/broadcast ONCE per grid step (hoisted out of the
    # per-image loop).
    w1s = wcat_ref[:, 0:Cin]                               # folded 1x1+shuffle (C2,Cin)
    wblk = wcat_ref[:, Cin:Cin + C2]                       # block-diag 1x1+BN2+BNf (C2,C2)
    c0 = Cin + C2
    b1 = jnp.broadcast_to(wcat_ref[:, c0 + 0:c0 + 1], (C2, HW))   # BN1 bias
    a1 = jnp.broadcast_to(wcat_ref[:, c0 + 1:c0 + 2], (C2, HW))   # PReLU1 alpha
    b2 = jnp.broadcast_to(wcat_ref[:, c0 + 2:c0 + 3], (C2, HW))   # BN2+BNf bias
    a2 = jnp.broadcast_to(wcat_ref[:, c0 + 3:c0 + 4], (C2, HW))   # final PReLU alpha

    # static tap schedule (trace-time)
    taps = []
    for oy in range(-MAXPAD, MAXPAD + 1):
        for ox in range(-MAXPAD, MAXPAD + 1):
            t = (oy + MAXPAD) * NTAPS + (ox + MAXPAD)
            taps.append((t, (-(oy * W + ox)) % HW))

    def process(i0):
        # interleave `unroll` images so the tiny (8,8)x(8,HW) MXU dots of one
        # image overlap the VPU/XLU tap loop of another.
        ys, accs = [], []
        for u in range(unroll):
            x = x_ref[i0 + u]                              # (Cin, HW)
            ys.append(jnp.dot(w1s, x, preferred_element_type=jnp.float32))
            accs.append(None)
        # depthwise 3x3 and 5x5 convs in one 25-tap pass; boundary masks and
        # BN1 scale are pre-folded into wdwm, so each tap is roll+mul+add.
        for t, shift in taps:
            wt = wdwm_ref[t]                               # (C2, HW), shared by images
            for u in range(unroll):
                sh = ys[u] if shift == 0 else pltpu.roll(ys[u], shift, axis=1)
                accs[u] = sh * wt if accs[u] is None else accs[u] + sh * wt
        for u in range(unroll):
            v = accs[u] + b1
            v = jnp.where(v >= 0, v, a1 * v)               # PReLU (per channel)
            z = jnp.dot(wblk, v, preferred_element_type=jnp.float32) + b2
            z = jnp.where(z >= 0, z, a2 * z)               # final PReLU
            o_ref[i0 + u] = z                              # lane-dense store

    n_iter = nb // unroll
    if n_iter == 1:
        process(0)
    else:
        def body(it, carry):
            process(it * unroll)
            return carry
        lax.fori_loop(0, n_iter, body, 0)


def s2_module(x_nchw, kp, nb_target=32):
    N, Cin, H, W = x_nchw.shape
    HW = H * W
    C2 = kp["wcat"].shape[0]

    # trace-time: fold zero-padding boundary masks into the depthwise taps.
    pcol = np.arange(HW, dtype=np.int64)
    h_idx, w_idx = pcol // W, pcol % W
    masks = []
    for oy in range(-MAXPAD, MAXPAD + 1):
        for ox in range(-MAXPAD, MAXPAD + 1):
            m = ((h_idx + oy >= 0) & (h_idx + oy < H) &
                 (w_idx + ox >= 0) & (w_idx + ox < W))
            masks.append(m.astype(np.float32))
    mask = jnp.asarray(np.stack(masks, axis=0))            # (25, HW)
    wdwm = kp["wdw"].T[:, :, None] * mask[:, None, :]      # (25, C2, HW) ~200 KiB

    # batch images per grid step to amortize per-step pipeline overhead while
    # keeping >= 2 grid steps so v7x's two TensorCores both get work.
    nb = max(1, min(nb_target, N // 2)) if N >= 2 else 1
    if nb >= 2:
        nb -= nb & 1                                       # even -> 2-way interleave
    unroll = 2 if nb % 2 == 0 else 1
    n_steps = int(pl.cdiv(N, nb))
    Npad = n_steps * nb

    x = x_nchw.reshape(N, Cin, HW)                         # NCHW -> (N,C,H*W), no transpose
    if Npad != N:
        x = jnp.pad(x, ((0, Npad - N), (0, 0), (0, 0)))

    out = pl.pallas_call(
        functools.partial(s2_kernel, W, unroll),
        out_shape=jax.ShapeDtypeStruct((Npad, C2, HW), jnp.float32),
        grid_spec=pltpu.PrefetchScalarGridSpec(
            num_scalar_prefetch=0,
            grid=(n_steps,),
            in_specs=[
                pl.BlockSpec((nb, Cin, HW), lambda n: (n, 0, 0)),
                pl.BlockSpec((C2, kp["wcat"].shape[1]), lambda n: (0, 0)),
                pl.BlockSpec((NTAPS * NTAPS, C2, HW), lambda n: (0, 0, 0)),
            ],
            out_specs=pl.BlockSpec((nb, C2, HW), lambda n: (n, 0, 0)),
        ),
        compiler_params=pltpu.CompilerParams(dimension_semantics=("parallel",)),
    )(x, kp["wcat"], wdwm)
    return out[:N].reshape(N, C2, H, W)


# ----------------------------- parameters ----------------------------------

def init_params(key, num_input, num_output):
    """Deterministic torch-like parameters (unfolded)."""
    G = NUM_GROUPS
    Cmid = num_output // G
    cin_pg = num_input // G
    ks = iter(jax.random.split(key, 40))

    def nrm(shape, scale=0.5):
        return scale * jax.random.normal(next(ks), shape, jnp.float32)

    def bn(c):
        gamma = 1.0 + 0.2 * jax.random.normal(next(ks), (c,), jnp.float32)
        beta = 0.1 * jax.random.normal(next(ks), (c,), jnp.float32)
        mean = 0.1 * jax.random.normal(next(ks), (c,), jnp.float32)
        var = jnp.abs(jax.random.normal(next(ks), (c,), jnp.float32)) + 0.5
        return (gamma, beta, mean, var)

    def alpha(c):
        return 0.25 + 0.05 * jax.random.normal(next(ks), (c,), jnp.float32)

    return dict(
        w1=nrm((Cmid, cin_pg, 1, 1)),                      # grouped 1x1 conv
        dw=[nrm((Cmid, 1, k, k)) for k in KSIZES],         # depthwise convs
        bn1=[bn(Cmid) for _ in KSIZES],
        alpha1=[alpha(Cmid) for _ in KSIZES],
        pw=[nrm((Cmid, Cmid, 1, 1)) for _ in KSIZES],      # pointwise convs
        bn2=[bn(Cmid) for _ in KSIZES],
        bnf=bn(num_output),
        alphaf=alpha(num_output),
    )


def _bn_fold(bnp):
    gamma, beta, mean, var = bnp
    s = gamma / jnp.sqrt(var + EPS)
    return s, beta - mean * s


def pack_params(p, num_input, num_output):
    """Fold/repack torch-like params into the kernel layout."""
    G = NUM_GROUPS
    Cmid = num_output // G
    cin_pg = num_input // G
    cpg_shuffle = Cmid // G
    C2 = 2 * Cmid

    # grouped 1x1 conv + channel_shuffle -> dense (Cmid, Cin), then stacked x2
    w1 = p["w1"][:, :, 0, 0]                               # (Cmid, cin_pg)
    w1t = jnp.zeros((Cmid, num_input), jnp.float32)
    for c_new in range(Cmid):
        c_old = (c_new % G) * cpg_shuffle + (c_new // G)   # channel_shuffle perm
        g = c_old // (Cmid // G)                           # conv output group
        w1t = w1t.at[c_new, g * cin_pg:(g + 1) * cin_pg].set(w1[c_old])
    w1s = jnp.concatenate([w1t, w1t], axis=0)              # (C2, Cin)

    wdw = jnp.zeros((C2, NTAPS * NTAPS), jnp.float32)
    wblk = jnp.zeros((C2, C2), jnp.float32)
    cvec = jnp.zeros((C2, 4), jnp.float32)
    fS, fT = _bn_fold(p["bnf"])
    for b, k in enumerate(KSIZES):
        rows = slice(b * Cmid, (b + 1) * Cmid)
        s1, t1 = _bn_fold(p["bn1"][b])
        s2, t2 = _bn_fold(p["bn2"][b])
        fs, ft = fS[rows], fT[rows]

        dw = p["dw"][b][:, 0]                              # (Cmid, k, k)
        off = (NTAPS - k) // 2
        dw5 = jnp.zeros((Cmid, NTAPS, NTAPS), jnp.float32)
        dw5 = dw5.at[:, off:off + k, off:off + k].set(dw)  # embed kxk in 5x5
        wdw = wdw.at[rows].set((dw5 * s1[:, None, None]).reshape(Cmid, NTAPS * NTAPS))

        pw = p["pw"][b][:, :, 0, 0]                        # (Cmid, Cmid)
        wblk = wblk.at[rows, rows].set(pw * (s2 * fs)[:, None])

        cvec = cvec.at[rows, 0].set(t1)                    # BN1 bias
        cvec = cvec.at[rows, 1].set(p["alpha1"][b])        # PReLU1 alpha
        cvec = cvec.at[rows, 2].set(t2 * fs + ft)          # BN2+BNf bias
        cvec = cvec.at[rows, 3].set(p["alphaf"][rows])     # final PReLU alpha

    # pack small weights into one lane-dense (C2, 128k) constant
    total = num_input + C2 + 4
    width = ((total + 127) // 128) * 128
    wcat = jnp.concatenate(
        [w1s, wblk, cvec, jnp.zeros((C2, width - total), jnp.float32)], axis=1)

    return dict(wcat=wcat, wdw=wdw)


# ----------------------------- reference ------------------------------------

def reference(x, p):
    """Pure-JAX NCHW reference using the unfolded (torch-like) parameters."""
    hi = lax.Precision.HIGHEST
    G = NUM_GROUPS
    dn = ("NCHW", "OIHW", "NCHW")

    def bn(t, bnp):
        gamma, beta, mean, var = bnp
        s = gamma / jnp.sqrt(var + EPS)
        return t * s[None, :, None, None] + (beta - mean * s)[None, :, None, None]

    def prelu(t, a):
        return jnp.where(t >= 0, t, a[None, :, None, None] * t)

    y = lax.conv_general_dilated(x, p["w1"], (1, 1), "VALID",
                                 dimension_numbers=dn, feature_group_count=G,
                                 precision=hi)
    n, c, H, W = y.shape
    y = y.reshape(n, G, c // G, H, W).transpose(0, 2, 1, 3, 4).reshape(n, c, H, W)

    Cmid = c
    outs = []
    for b, k in enumerate(KSIZES):
        pad = (k - 1) // 2
        t = lax.conv_general_dilated(y, p["dw"][b], (1, 1),
                                     ((pad, pad), (pad, pad)),
                                     dimension_numbers=dn,
                                     feature_group_count=Cmid, precision=hi)
        t = bn(t, p["bn1"][b])
        t = prelu(t, p["alpha1"][b])
        t = lax.conv_general_dilated(t, p["pw"][b], (1, 1), "VALID",
                                     dimension_numbers=dn, precision=hi)
        t = bn(t, p["bn2"][b])
        outs.append(t)
    z = jnp.concatenate(outs, axis=1)
    z = bn(z, p["bnf"])
    z = prelu(z, p["alphaf"])
    return z


if __name__ == "__main__":
    N, Cin, H, W = 2, 8, 16, 16
    Cout = 8                                               # num_output

    key = jax.random.PRNGKey(0)
    kx, kp = jax.random.split(key)
    x_nchw = jax.random.normal(kx, (N, Cin, H, W), jnp.float32)   # PyTorch layout

    params = init_params(kp, Cin, Cout)
    kparams = pack_params(params, Cin, Cout)

    out = s2_module(x_nchw, kparams)
    out = jax.block_until_ready(out)
    assert out.shape == (N, Cout, H, W)

    ref = reference(x_nchw, params)
    np.testing.assert_allclose(np.asarray(out), np.asarray(ref),
                               rtol=2e-3, atol=2e-3)
    print("KERNEL_OK")
</pallas_src>

<mosaic_0001>
module attributes {stable_mosaic.version = 11 : i64} {
  func.func @s2_kernel(%arg0: i32, %arg1: memref<1x8x256xf32, #tpu.memory_space<vmem>>, %arg2: memref<8x128xf32, #tpu.memory_space<vmem>>, %arg3: memref<25x8x256xf32, #tpu.memory_space<vmem>>, %arg4: memref<1x8x256xf32, #tpu.memory_space<vmem>>) attributes {dimension_semantics = [#tpu.dimension_semantics<parallel>], iteration_bounds = array<i64: 2>, scalar_prefetch = 0 : i64, scratch_operands = 0 : i64, tpu.core_type = #tpu.core_type<tc>, window_params = [{transform_indices = @transform_0, window_bounds = array<i64: 1, 8, 256>}, {pipeline_mode = #tpu.pipeline_mode<synchronous>, transform_indices = @transform_1, window_bounds = array<i64: 8, 128>}, {pipeline_mode = #tpu.pipeline_mode<synchronous>, transform_indices = @transform_2, window_bounds = array<i64: 25, 8, 256>}, {transform_indices = @transform_3, window_bounds = array<i64: 1, 8, 256>}]} {
    %c0 = arith.constant 0 : index
    %c0_0 = arith.constant 0 : index
    %0 = vector.load %arg2[%c0, %c0_0] : memref<8x128xf32, #tpu.memory_space<vmem>>, vector<8x8xf32>
    %c0_1 = arith.constant 0 : index
    %c8 = arith.constant 8 : index
    %1 = vector.load %arg2[%c0_1, %c8] : memref<8x128xf32, #tpu.memory_space<vmem>>, vector<8x8xf32>
    %c0_2 = arith.constant 0 : index
    %c16 = arith.constant 16 : index
    %2 = vector.load %arg2[%c0_2, %c16] : memref<8x128xf32, #tpu.memory_space<vmem>>, vector<8x1xf32>
    %3 = vector.shape_cast %2 : vector<8x1xf32> to vector<8x1xf32>
    %4 = vector.broadcast %3 : vector<8x1xf32> to vector<8x256xf32>
    %c0_3 = arith.constant 0 : index
    %c17 = arith.constant 17 : index
    %5 = vector.load %arg2[%c0_3, %c17] : memref<8x128xf32, #tpu.memory_space<vmem>>, vector<8x1xf32>
    %6 = vector.shape_cast %5 : vector<8x1xf32> to vector<8x1xf32>
    %7 = vector.broadcast %6 : vector<8x1xf32> to vector<8x256xf32>
    %c0_4 = arith.constant 0 : index
    %c18 = arith.constant 18 : index
    %8 = vector.load %arg2[%c0_4, %c18] : memref<8x128xf32, #tpu.memory_space<vmem>>, vector<8x1xf32>
    %9 = vector.shape_cast %8 : vector<8x1xf32> to vector<8x1xf32>
    %10 = vector.broadcast %9 : vector<8x1xf32> to vector<8x256xf32>
    %c0_5 = arith.constant 0 : index
    %c19 = arith.constant 19 : index
    %11 = vector.load %arg2[%c0_5, %c19] : memref<8x128xf32, #tpu.memory_space<vmem>>, vector<8x1xf32>
    %12 = vector.shape_cast %11 : vector<8x1xf32> to vector<8x1xf32>
    %13 = vector.broadcast %12 : vector<8x1xf32> to vector<8x256xf32>
    %c0_6 = arith.constant 0 : index
    %c0_7 = arith.constant 0 : index
    %c0_8 = arith.constant 0 : index
    %14 = vector.load %arg1[%c0_6, %c0_7, %c0_8] : memref<1x8x256xf32, #tpu.memory_space<vmem>>, vector<1x8x256xf32>
    %15 = vector.shape_cast %14 : vector<1x8x256xf32> to vector<8x256xf32>
    %cst = arith.constant dense<0.000000e+00> : vector<8x256xf32>
    %16 = tpu.matmul %0, %15, %cst {dimension_numbers = #tpu.dot_dimension_numbers<[1], [0], [0], [1], [0, 0, 1, 1], [], []>} : vector<8x8xf32>, vector<8x256xf32>, vector<8x256xf32> -> vector<8x256xf32>
    %c0_9 = arith.constant 0 : index
    %c0_10 = arith.constant 0 : index
    %c0_11 = arith.constant 0 : index
    %17 = vector.load %arg3[%c0_9, %c0_10, %c0_11] : memref<25x8x256xf32, #tpu.memory_space<vmem>>, vector<1x8x256xf32>
    %18 = vector.shape_cast %17 : vector<1x8x256xf32> to vector<8x256xf32>
    %c34_i32 = arith.constant 34 : i32
    %19 = tpu.dynamic_rotate %16 by %c34_i32 dim 1 : vector<8x256xf32>, i32 -> vector<8x256xf32>
    %20 = arith.mulf %19, %18 : vector<8x256xf32>
    %c1 = arith.constant 1 : index
    %c0_12 = arith.constant 0 : index
    %c0_13 = arith.constant 0 : index
    %21 = vector.load %arg3[%c1, %c0_12, %c0_13] : memref<25x8x256xf32, #tpu.memory_space<vmem>>, vector<1x8x256xf32>
    %22 = vector.shape_cast %21 : vector<1x8x256xf32> to vector<8x256xf32>
    %c33_i32 = arith.constant 33 : i32
    %23 = tpu.dynamic_rotate %16 by %c33_i32 dim 1 : vector<8x256xf32>, i32 -> vector<8x256xf32>
    %24 = arith.mulf %23, %22 : vector<8x256xf32>
    %25 = arith.addf %20, %24 : vector<8x256xf32>
    %c2 = arith.constant 2 : index
    %c0_14 = arith.constant 0 : index
    %c0_15 = arith.constant 0 : index
    %26 = vector.load %arg3[%c2, %c0_14, %c0_15] : memref<25x8x256xf32, #tpu.memory_space<vmem>>, vector<1x8x256xf32>
    %27 = vector.shape_cast %26 : vector<1x8x256xf32> to vector<8x256xf32>
    %c32_i32 = arith.constant 32 : i32
    %28 = tpu.dynamic_rotate %16 by %c32_i32 dim 1 : vector<8x256xf32>, i32 -> vector<8x256xf32>
    %29 = arith.mulf %28, %27 : vector<8x256xf32>
    %30 = arith.addf %25, %29 : vector<8x256xf32>
    %c3 = arith.constant 3 : index
    %c0_16 = arith.constant 0 : index
    %c0_17 = arith.constant 0 : index
    %31 = vector.load %arg3[%c3, %c0_16, %c0_17] : memref<25x8x256xf32, #tpu.memory_space<vmem>>, vector<1x8x256xf32>
    %32 = vector.shape_cast %31 : vector<1x8x256xf32> to vector<8x256xf32>
    %c31_i32 = arith.constant 31 : i32
    %33 = tpu.dynamic_rotate %16 by %c31_i32 dim 1 : vector<8x256xf32>, i32 -> vector<8x256xf32>
    %34 = arith.mulf %33, %32 : vector<8x256xf32>
    %35 = arith.addf %30, %34 : vector<8x256xf32>
    %c4 = arith.constant 4 : index
    %c0_18 = arith.constant 0 : index
    %c0_19 = arith.constant 0 : index
    %36 = vector.load %arg3[%c4, %c0_18, %c0_19] : memref<25x8x256xf32, #tpu.memory_space<vmem>>, vector<1x8x256xf32>
    %37 = vector.shape_cast %36 : vector<1x8x256xf32> to vector<8x256xf32>
    %c30_i32 = arith.constant 30 : i32
    %38 = tpu.dynamic_rotate %16 by %c30_i32 dim 1 : vector<8x256xf32>, i32 -> vector<8x256xf32>
    %39 = arith.mulf %38, %37 : vector<8x256xf32>
    %40 = arith.addf %35, %39 : vector<8x256xf32>
    %c5 = arith.constant 5 : index
    %c0_20 = arith.constant 0 : index
    %c0_21 = arith.constant 0 : index
    %41 = vector.load %arg3[%c5, %c0_20, %c0_21] : memref<25x8x256xf32, #tpu.memory_space<vmem>>, vector<1x8x256xf32>
    %42 = vector.shape_cast %41 : vector<1x8x256xf32> to vector<8x256xf32>
    %c18_i32 = arith.constant 18 : i32
    %43 = tpu.dynamic_rotate %16 by %c18_i32 dim 1 : vector<8x256xf32>, i32 -> vector<8x256xf32>
    %44 = arith.mulf %43, %42 : vector<8x256xf32>
    %45 = arith.addf %40, %44 : vector<8x256xf32>
    %c6 = arith.constant 6 : index
    %c0_22 = arith.constant 0 : index
    %c0_23 = arith.constant 0 : index
    %46 = vector.load %arg3[%c6, %c0_22, %c0_23] : memref<25x8x256xf32, #tpu.memory_space<vmem>>, vector<1x8x256xf32>
    %47 = vector.shape_cast %46 : vector<1x8x256xf32> to vector<8x256xf32>
    %c17_i32 = arith.constant 17 : i32
    %48 = tpu.dynamic_rotate %16 by %c17_i32 dim 1 : vector<8x256xf32>, i32 -> vector<8x256xf32>
    %49 = arith.mulf %48, %47 : vector<8x256xf32>
    %50 = arith.addf %45, %49 : vector<8x256xf32>
    %c7 = arith.constant 7 : index
    %c0_24 = arith.constant 0 : index
    %c0_25 = arith.constant 0 : index
    %51 = vector.load %arg3[%c7, %c0_24, %c0_25] : memref<25x8x256xf32, #tpu.memory_space<vmem>>, vector<1x8x256xf32>
    %52 = vector.shape_cast %51 : vector<1x8x256xf32> to vector<8x256xf32>
    %c16_i32 = arith.constant 16 : i32
    %53 = tpu.dynamic_rotate %16 by %c16_i32 dim 1 : vector<8x256xf32>, i32 -> vector<8x256xf32>
    %54 = arith.mulf %53, %52 : vector<8x256xf32>
    %55 = arith.addf %50, %54 : vector<8x256xf32>
    %c8_26 = arith.constant 8 : index
    %c0_27 = arith.constant 0 : index
    %c0_28 = arith.constant 0 : index
    %56 = vector.load %arg3[%c8_26, %c0_27, %c0_28] : memref<25x8x256xf32, #tpu.memory_space<vmem>>, vector<1x8x256xf32>
    %57 = vector.shape_cast %56 : vector<1x8x256xf32> to vector<8x256xf32>
    %c15_i32 = arith.constant 15 : i32
    %58 = tpu.dynamic_rotate %16 by %c15_i32 dim 1 : vector<8x256xf32>, i32 -> vector<8x256xf32>
    %59 = arith.mulf %58, %57 : vector<8x256xf32>
    %60 = arith.addf %55, %59 : vector<8x256xf32>
    %c9 = arith.constant 9 : index
    %c0_29 = arith.constant 0 : index
    %c0_30 = arith.constant 0 : index
    %61 = vector.load %arg3[%c9, %c0_29, %c0_30] : memref<25x8x256xf32, #tpu.memory_space<vmem>>, vector<1x8x256xf32>
    %62 = vector.shape_cast %61 : vector<1x8x256xf32> to vector<8x256xf32>
    %c14_i32 = arith.constant 14 : i32
    %63 = tpu.dynamic_rotate %16 by %c14_i32 dim 1 : vector<8x256xf32>, i32 -> vector<8x256xf32>
    %64 = arith.mulf %63, %62 : vector<8x256xf32>
    %65 = arith.addf %60, %64 : vector<8x256xf32>
    %c10 = arith.constant 10 : index
    %c0_31 = arith.constant 0 : index
    %c0_32 = arith.constant 0 : index
    %66 = vector.load %arg3[%c10, %c0_31, %c0_32] : memref<25x8x256xf32, #tpu.memory_space<vmem>>, vector<1x8x256xf32>
    %67 = vector.shape_cast %66 : vector<1x8x256xf32> to vector<8x256xf32>
    %c2_i32 = arith.constant 2 : i32
    %68 = tpu.dynamic_rotate %16 by %c2_i32 dim 1 : vector<8x256xf32>, i32 -> vector<8x256xf32>
    %69 = arith.mulf %68, %67 : vector<8x256xf32>
    %70 = arith.addf %65, %69 : vector<8x256xf32>
    %c11 = arith.constant 11 : index
    %c0_33 = arith.constant 0 : index
    %c0_34 = arith.constant 0 : index
    %71 = vector.load %arg3[%c11, %c0_33, %c0_34] : memref<25x8x256xf32, #tpu.memory_space<vmem>>, vector<1x8x256xf32>
    %72 = vector.shape_cast %71 : vector<1x8x256xf32> to vector<8x256xf32>
    %c1_i32 = arith.constant 1 : i32
    %73 = tpu.dynamic_rotate %16 by %c1_i32 dim 1 : vector<8x256xf32>, i32 -> vector<8x256xf32>
    %74 = arith.mulf %73, %72 : vector<8x256xf32>
    %75 = arith.addf %70, %74 : vector<8x256xf32>
    %c12 = arith.constant 12 : index
    %c0_35 = arith.constant 0 : index
    %c0_36 = arith.constant 0 : index
    %76 = vector.load %arg3[%c12, %c0_35, %c0_36] : memref<25x8x256xf32, #tpu.memory_space<vmem>>, vector<1x8x256xf32>
    %77 = vector.shape_cast %76 : vector<1x8x256xf32> to vector<8x256xf32>
    %78 = arith.mulf %16, %77 : vector<8x256xf32>
    %79 = arith.addf %75, %78 : vector<8x256xf32>
    %c13 = arith.constant 13 : index
    %c0_37 = arith.constant 0 : index
    %c0_38 = arith.constant 0 : index
    %80 = vector.load %arg3[%c13, %c0_37, %c0_38] : memref<25x8x256xf32, #tpu.memory_space<vmem>>, vector<1x8x256xf32>
    %81 = vector.shape_cast %80 : vector<1x8x256xf32> to vector<8x256xf32>
    %c255_i32 = arith.constant 255 : i32
    %82 = tpu.dynamic_rotate %16 by %c255_i32 dim 1 : vector<8x256xf32>, i32 -> vector<8x256xf32>
    %83 = arith.mulf %82, %81 : vector<8x256xf32>
    %84 = arith.addf %79, %83 : vector<8x256xf32>
    %c14 = arith.constant 14 : index
    %c0_39 = arith.constant 0 : index
    %c0_40 = arith.constant 0 : index
    %85 = vector.load %arg3[%c14, %c0_39, %c0_40] : memref<25x8x256xf32, #tpu.memory_space<vmem>>, vector<1x8x256xf32>
    %86 = vector.shape_cast %85 : vector<1x8x256xf32> to vector<8x256xf32>
    %c254_i32 = arith.constant 254 : i32
    %87 = tpu.dynamic_rotate %16 by %c254_i32 dim 1 : vector<8x256xf32>, i32 -> vector<8x256xf32>
    %88 = arith.mulf %87, %86 : vector<8x256xf32>
    %89 = arith.addf %84, %88 : vector<8x256xf32>
    %c15 = arith.constant 15 : index
    %c0_41 = arith.constant 0 : index
    %c0_42 = arith.constant 0 : index
    %90 = vector.load %arg3[%c15, %c0_41, %c0_42] : memref<25x8x256xf32, #tpu.memory_space<vmem>>, vector<1x8x256xf32>
    %91 = vector.shape_cast %90 : vector<1x8x256xf32> to vector<8x256xf32>
    %c242_i32 = arith.constant 242 : i32
    %92 = tpu.dynamic_rotate %16 by %c242_i32 dim 1 : vector<8x256xf32>, i32 -> vector<8x256xf32>
    %93 = arith.mulf %92, %91 : vector<8x256xf32>
    %94 = arith.addf %89, %93 : vector<8x256xf32>
    %c16_43 = arith.constant 16 : index
    %c0_44 = arith.constant 0 : index
    %c0_45 = arith.constant 0 : index
    %95 = vector.load %arg3[%c16_43, %c0_44, %c0_45] : memref<25x8x256xf32, #tpu.memory_space<vmem>>, vector<1x8x256xf32>
    %96 = vector.shape_cast %95 : vector<1x8x256xf32> to vector<8x256xf32>
    %c241_i32 = arith.constant 241 : i32
    %97 = tpu.dynamic_rotate %16 by %c241_i32 dim 1 : vector<8x256xf32>, i32 -> vector<8x256xf32>
    %98 = arith.mulf %97, %96 : vector<8x256xf32>
    %99 = arith.addf %94, %98 : vector<8x256xf32>
    %c17_46 = arith.constant 17 : index
    %c0_47 = arith.constant 0 : index
    %c0_48 = arith.constant 0 : index
    %100 = vector.load %arg3[%c17_46, %c0_47, %c0_48] : memref<25x8x256xf32, #tpu.memory_space<vmem>>, vector<1x8x256xf32>
    %101 = vector.shape_cast %100 : vector<1x8x256xf32> to vector<8x256xf32>
    %c240_i32 = arith.constant 240 : i32
    %102 = tpu.dynamic_rotate %16 by %c240_i32 dim 1 : vector<8x256xf32>, i32 -> vector<8x256xf32>
    %103 = arith.mulf %102, %101 : vector<8x256xf32>
    %104 = arith.addf %99, %103 : vector<8x256xf32>
    %c18_49 = arith.constant 18 : index
    %c0_50 = arith.constant 0 : index
    %c0_51 = arith.constant 0 : index
    %105 = vector.load %arg3[%c18_49, %c0_50, %c0_51] : memref<25x8x256xf32, #tpu.memory_space<vmem>>, vector<1x8x256xf32>
    %106 = vector.shape_cast %105 : vector<1x8x256xf32> to vector<8x256xf32>
    %c239_i32 = arith.constant 239 : i32
    %107 = tpu.dynamic_rotate %16 by %c239_i32 dim 1 : vector<8x256xf32>, i32 -> vector<8x256xf32>
    %108 = arith.mulf %107, %106 : vector<8x256xf32>
    %109 = arith.addf %104, %108 : vector<8x256xf32>
    %c19_52 = arith.constant 19 : index
    %c0_53 = arith.constant 0 : index
    %c0_54 = arith.constant 0 : index
    %110 = vector.load %arg3[%c19_52, %c0_53, %c0_54] : memref<25x8x256xf32, #tpu.memory_space<vmem>>, vector<1x8x256xf32>
    %111 = vector.shape_cast %110 : vector<1x8x256xf32> to vector<8x256xf32>
    %c238_i32 = arith.constant 238 : i32
    %112 = tpu.dynamic_rotate %16 by %c238_i32 dim 1 : vector<8x256xf32>, i32 -> vector<8x256xf32>
    %113 = arith.mulf %112, %111 : vector<8x256xf32>
    %114 = arith.addf %109, %113 : vector<8x256xf32>
    %c20 = arith.constant 20 : index
    %c0_55 = arith.constant 0 : index
    %c0_56 = arith.constant 0 : index
    %115 = vector.load %arg3[%c20, %c0_55, %c0_56] : memref<25x8x256xf32, #tpu.memory_space<vmem>>, vector<1x8x256xf32>
    %116 = vector.shape_cast %115 : vector<1x8x256xf32> to vector<8x256xf32>
    %c226_i32 = arith.constant 226 : i32
    %117 = tpu.dynamic_rotate %16 by %c226_i32 dim 1 : vector<8x256xf32>, i32 -> vector<8x256xf32>
    %118 = arith.mulf %117, %116 : vector<8x256xf32>
    %119 = arith.addf %114, %118 : vector<8x256xf32>
    %c21 = arith.constant 21 : index
    %c0_57 = arith.constant 0 : index
    %c0_58 = arith.constant 0 : index
    %120 = vector.load %arg3[%c21, %c0_57, %c0_58] : memref<25x8x256xf32, #tpu.memory_space<vmem>>, vector<1x8x256xf32>
    %121 = vector.shape_cast %120 : vector<1x8x256xf32> to vector<8x256xf32>
    %c225_i32 = arith.constant 225 : i32
    %122 = tpu.dynamic_rotate %16 by %c225_i32 dim 1 : vector<8x256xf32>, i32 -> vector<8x256xf32>
    %123 = arith.mulf %122, %121 : vector<8x256xf32>
    %124 = arith.addf %119, %123 : vector<8x256xf32>
    %c22 = arith.constant 22 : index
    %c0_59 = arith.constant 0 : index
    %c0_60 = arith.constant 0 : index
    %125 = vector.load %arg3[%c22, %c0_59, %c0_60] : memref<25x8x256xf32, #tpu.memory_space<vmem>>, vector<1x8x256xf32>
    %126 = vector.shape_cast %125 : vector<1x8x256xf32> to vector<8x256xf32>
    %c224_i32 = arith.constant 224 : i32
    %127 = tpu.dynamic_rotate %16 by %c224_i32 dim 1 : vector<8x256xf32>, i32 -> vector<8x256xf32>
    %128 = arith.mulf %127, %126 : vector<8x256xf32>
    %129 = arith.addf %124, %128 : vector<8x256xf32>
    %c23 = arith.constant 23 : index
    %c0_61 = arith.constant 0 : index
    %c0_62 = arith.constant 0 : index
    %130 = vector.load %arg3[%c23, %c0_61, %c0_62] : memref<25x8x256xf32, #tpu.memory_space<vmem>>, vector<1x8x256xf32>
    %131 = vector.shape_cast %130 : vector<1x8x256xf32> to vector<8x256xf32>
    %c223_i32 = arith.constant 223 : i32
    %132 = tpu.dynamic_rotate %16 by %c223_i32 dim 1 : vector<8x256xf32>, i32 -> vector<8x256xf32>
    %133 = arith.mulf %132, %131 : vector<8x256xf32>
    %134 = arith.addf %129, %133 : vector<8x256xf32>
    %c24 = arith.constant 24 : index
    %c0_63 = arith.constant 0 : index
    %c0_64 = arith.constant 0 : index
    %135 = vector.load %arg3[%c24, %c0_63, %c0_64] : memref<25x8x256xf32, #tpu.memory_space<vmem>>, vector<1x8x256xf32>
    %136 = vector.shape_cast %135 : vector<1x8x256xf32> to vector<8x256xf32>
    %c222_i32 = arith.constant 222 : i32
    %137 = tpu.dynamic_rotate %16 by %c222_i32 dim 1 : vector<8x256xf32>, i32 -> vector<8x256xf32>
    %138 = arith.mulf %137, %136 : vector<8x256xf32>
    %139 = arith.addf %134, %138 : vector<8x256xf32>
    %140 = arith.addf %139, %4 : vector<8x256xf32>
    %cst_65 = arith.constant 0.000000e+00 : f32
    %141 = vector.broadcast %cst_65 : f32 to vector<8x256xf32>
    %142 = arith.cmpf oge, %140, %141 : vector<8x256xf32>
    %143 = arith.mulf %7, %140 : vector<8x256xf32>
    %144 = arith.select %142, %140, %143 : vector<8x256xi1>, vector<8x256xf32>
    %cst_66 = arith.constant dense<0.000000e+00> : vector<8x256xf32>
    %145 = tpu.matmul %1, %144, %cst_66 {dimension_numbers = #tpu.dot_dimension_numbers<[1], [0], [0], [1], [0, 0, 1, 1], [], []>} : vector<8x8xf32>, vector<8x256xf32>, vector<8x256xf32> -> vector<8x256xf32>
    %146 = arith.addf %145, %10 : vector<8x256xf32>
    %cst_67 = arith.constant 0.000000e+00 : f32
    %147 = vector.broadcast %cst_67 : f32 to vector<8x256xf32>
    %148 = arith.cmpf oge, %146, %147 : vector<8x256xf32>
    %149 = arith.mulf %13, %146 : vector<8x256xf32>
    %150 = arith.select %148, %146, %149 : vector<8x256xi1>, vector<8x256xf32>
    %c0_68 = arith.constant 0 : index
    %c0_69 = arith.constant 0 : index
    %c0_70 = arith.constant 0 : index
    %151 = vector.load %arg4[%c0_68, %c0_69, %c0_70] : memref<1x8x256xf32, #tpu.memory_space<vmem>>, vector<1x8x256xf32>
    %152 = vector.shape_cast %151 : vector<1x8x256xf32> to vector<8x256xf32>
    %153 = vector.shape_cast %150 : vector<8x256xf32> to vector<1x8x256xf32>
    tpu.vector_store %arg4[%c0_68, %c0_69, %c0_70], %153 {strides = array<i32>} : memref<1x8x256xf32, #tpu.memory_space<vmem>>, vector<1x8x256xf32>,
    return
  }
  func.func @transform_0(%arg0: i32) -> (i32, i32, i32) {
    %c0_i32 = arith.constant 0 : i32
    %c0_i32_0 = arith.constant 0 : i32
    %c0_i32_1 = arith.constant 0 : i32
    return %arg0, %c0_i32, %c0_i32_0 : i32, i32, i32
  }
  func.func @transform_1(%arg0: i32) -> (i32, i32) {
    %c0_i32 = arith.constant 0 : i32
    %c0_i32_0 = arith.constant 0 : i32
    %c0_i32_1 = arith.constant 0 : i32
    return %c0_i32, %c0_i32_0 : i32, i32
  }
  func.func @transform_2(%arg0: i32) -> (i32, i32, i32) {
    %c0_i32 = arith.constant 0 : i32
    %c0_i32_0 = arith.constant 0 : i32
    %c0_i32_1 = arith.constant 0 : i32
    %c0_i32_2 = arith.constant 0 : i32
    return %c0_i32, %c0_i32_0, %c0_i32_1 : i32, i32, i32
  }
  func.func @transform_3(%arg0: i32) -> (i32, i32, i32) {
    %c0_i32 = arith.constant 0 : i32
    %c0_i32_0 = arith.constant 0 : i32
    %c0_i32_1 = arith.constant 0 : i32
    return %arg0, %c0_i32, %c0_i32_0 : i32, i32, i32
  }
}

</mosaic_0001>

<bundles_post_ra>
// kernel: tpu_custom_call.1
= control target key start
LH: loop header
LB: loop body
LE: loop exit
PB: predicated region body
PF: predicated region fallthrough
CT: control target
= control target key end

     0   :  { %8 = vsyncpa [#allocation3], 0  ;;  %s1646_s0 = inlined_call_operand.hbm [shape: f32[2,8,256], index: 0, kind: input, shape index: {}]   ;;  %s1647_s1 = inlined_call_operand.hbm [shape: f32[8,128], index: 1, kind: input, shape index: {}]   ;;  %s1648_s2 = inlined_call_operand.hbm [shape: f32[25,8,256], index: 2, kind: input, shape index: {}]   ;;  %s1649_s3 = inlined_call_operand.hbm [shape: f32[2,8,256], index: 3, kind: output, shape index: {}]  }
   0x1   :  { %10 = vsyncpa [#allocation3 + $0x1], 0 }
   0x2   :  { %11 = vsyncpa [#allocation6], 0 }
   0x3   :  { %12 = vsyncpa [#allocation4], 0 }
   0x4   :  { %14 = vsyncpa [#allocation4 + $0x1], 0  ;;  %s1184_s12 = smov 0   ;;  %s1186_s13 = smov 0  }
   0x5   :  { %s1188_s14 = smov 0   ;;  %s1190_s15 = smov 0  }
   0x6 LB: > { %s1205_s16 = sadd.s32 4294967295, %s1126_s15   ;;  %s845_s17 = sadd.s32 4294967294, %s1126_s15   ;;  %s1126_s15 = sphi %s1190_s15, %s1669_s15   ;;  %s1122_s14 = sphi %s1188_s14, %s1668_s14   ;;  %s1118_s13 = sphi %s1186_s13, %s1667_s13   ;;  %s1114_s12 = sphi %s1184_s12, %s1666_s12  }
   0x7   : > { %p40_p0 = scmp.ne.s32.totalorder %s1118_s13, %s1114_s12  ;;  %p1650_p1 = scmp.eq.s32.totalorder %s1205_s16, 0 }
   0x8   : > { %p112_p3 = scmp.eq.s32.totalorder %s845_s17, 1  ;;  %p846_p5 = scmp.ge.s32.totalorder %s1126_s15, 1 }
   0x9   : > { %p1214_p4 = por %p1650_p1, %p40_p0  ;;  %p119_p7 = scmp.lt.s32.totalorder %s1126_s15, 3 }
   0xa   : > { %p1219_p6 = por %p112_p3, %p40_p0  ;;  %s1128_s21 = smov [#allocation5]  }
   0xb   : > { %s1653_s18 = scalar_select %p1214_p4, 1, 0 }
   0xc   : > { %s1654_s19 = scalar_select %p1219_p6, 1, 0 }
   0xd   : > { %p1224_p8 = pnand %p846_p5, %p119_p7  ;;  %s132_s22 = sshll.u32 %s1128_s21, 4  ;;  %s133_s22 = int_to_ptr.vmem [resolvable:$true] %s132_s22 }
   0xe   : > { %s1129_s23 = smov [#allocation7]   ;;  %s970_s28 = scalar_lea.hbm %s1647_s1, 128 }
   0xf   : > { %s1655_s20 = scalar_select %p1224_p8, 1, 0 }
  0x10   : > { %p879_p10 = pneg %p1224_p8  ;;  %s142_s24 = sshll.u32 %s1129_s23, 4  ;;  %s1237_s24 = int_to_ptr.vmem [resolvable:$true] %s142_s24 }
  0x11   : > { %p971_p12 = scmp.ne.s32.totalorder %s1647_s1, %s970_s28  ;;  %p977_p5 = scmp.lt.u32.totalorder %s970_s28, %s1647_s1 }
  0x12   : > { %p1233_p11 = pnand %p879_p10, %p1650_p1 }
  0x14   : > { %p972_p13 = pneg %p1233_p11 }
  0x16   : > { %p973_p0 = pnand %p972_p13, %p971_p12 }
  0x18   : > { %p974_p3 = pneg %p973_p0 }
  0x1a   : > { %p979_p7 = pnand %p977_p5, %p974_p3 }
  0x1c   : > { %982 = shalt.err (!%p979_p7)
}
  0x1d   : > { %s983_s6 = scalar_lea.vmem %s133_s22, 128  ;;  %p991_p2 = scmp.lt.s32.totalorder %s133_s22, %s133_s22 }
  0x1e   : > { %p984_p10 = scmp.ne.s32.totalorder %s133_s22, %s983_s6  ;;  %p992_p6 = scmp.lt.s32.totalorder %s983_s6, %s983_s6 }
  0x20   : > { %p986_p9 = pnand %p984_p10, %p972_p13  ;;  %p993_p4 = por %p992_p6, %p991_p2 }
  0x22   : > { %p987_p1 = pneg %p986_p9 }
  0x24   : > { %p994_p8 = pnand %p993_p4, %p987_p1 }
  0x26   : > { %997 = shalt.err (!%p994_p8)
}
  0x27   : > { %882 = dma.hbm_to_vmem [thread:$0]  (!%p1233_p11), %s1647_s1, 128, %s133_s22, [#allocation6]  }
  0x28   : > { %s998_s11 = scalar_lea.hbm %s1648_s2, 6400 }
  0x29   : > { %p999_p9 = scmp.ne.s32.totalorder %s1648_s2, %s998_s11  ;;  %p1005_p4 = scmp.lt.u32.totalorder %s998_s11, %s1648_s2 }
  0x2b   : > { %p1001_p2 = pnand %p999_p9, %p972_p13 }
  0x2d   : > { %p1002_p1 = pneg %p1001_p2 }
  0x2f   : > { %p1007_p6 = pnand %p1005_p4, %p1002_p1 }
  0x31   : > { %1010 = shalt.err (!%p1007_p6)
}
  0x32   : > { %s1011_s22 = scalar_lea.vmem %s1237_s24, 6400  ;;  %p1019_p3 = scmp.lt.s32.totalorder %s1237_s24, %s1237_s24 }
  0x33   : > { %p1012_p8 = scmp.ne.s32.totalorder %s1237_s24, %s1011_s22  ;;  %p1020_p5 = scmp.lt.s32.totalorder %s1011_s22, %s1011_s22 }
  0x35   : > { %p1014_p12 = pnand %p1012_p8, %p972_p13  ;;  %p1021_p7 = por %p1020_p5, %p1019_p3 }
  0x37   : > { %p1015_p0 = pneg %p1014_p12 }
  0x39   : > { %p1022_p10 = pnand %p1021_p7, %p1015_p0 }
  0x3b   : > { %1025 = shalt.err (!%p1022_p10)
}
  0x3c   : > { %s1130_s27 = smov 256   ;;  %s1131_s28 = smov 16  }
  0x3d   : > { %885 = dma.hbm_to_vmem [thread:$0]  (!%p1233_p11), %s1648_s2, 6400, %s1237_s24, [#allocation6], %s1130_s27, %s1130_s27, %s1131_s28  }
  0x3e   : > { %s1287_s4 = sadd.s32 1, %s1126_s15   ;;  %s27_s5 = sadd.s32 1, %s1122_s14 }
  0x3f   : > { %s24_s6 = ssub.s32 %s1126_s15, %s1287_s4  ;;  %p34_p13 = scmp.ne.s32.totalorder %s1122_s14, %s1118_s13 }
  0x40   : > { %p25_p9 = scmp.eq.s32.totalorder %s24_s6, 0  ;;  %p35_p2 = scmp.eq.s32.totalorder %s1126_s15, 0 }
  0x41   : > { %p1657_p1 = scmp.eq.s32.totalorder %s1205_s16, 1  ;;  %p896_p6 = scmp.lt.s32.totalorder %s1126_s15, 2 }
  0x42   : > { %s1303_s8 = scalar_select %p25_p9, %s1122_s14, %s27_s5  }
  0x43   : > { %p1297_p4 = por %p1657_p1, %p34_p13  ;;  %p36_p8 = por %p35_p2, %p34_p13 }
  0x44   : > { %s156_s25 = sand.u32 1, %s1122_s14   ;;  %s865_s24 = sshll.u32 %s1126_s15, 8 }
  0x45   : > { %s850_s9 = sshll.u32 %s156_s25, 4  ;;  %s1310_s17 = scalar_lea.hbm %s1646_s0, %s865_s24 }
  0x46   : > { %s160_s21 = scalar_lea.vmem [#allocation2], %s850_s9  ;;  %p1314_p11 = pnand %p896_p6, %p36_p8 }
  0x47   : > { %s168_s23 = sshll.u32 %s160_s21, 4  ;;  %s157_s22 = scalar_lea.sflag [#allocation3], %s156_s25  ;;  %s1312_s23 = int_to_ptr.vmem [resolvable:$true] %s168_s23 }
  0x48   : > { %s1026_s27 = scalar_lea.hbm %s1310_s17, 256  ;;  %p1028_p0 = pneg %p1314_p11 }
  0x49   : > { %p1027_p12 = scmp.ne.s32.totalorder %s1310_s17, %s1026_s27  ;;  %s1031_s30 = scalar_lea.hbm %s1646_s0, 512 }
  0x4a   : > { %p1032_p7 = scmp.lt.u32.totalorder %s1310_s17, %s1646_s0  ;;  %p1033_p10 = scmp.lt.u32.totalorder %s1031_s30, %s1026_s27 }
  0x4b   : > { %p1029_p3 = pnand %p1028_p0, %p1027_p12  ;;  %p1035_p9 = scmp.lt.u32.totalorder %s1026_s27, %s1310_s17 }
  0x4c   : > { %p1034_p13 = por %p1033_p10, %p1032_p7 }
  0x4d   : > { %p1030_p5 = pneg %p1029_p3 }
  0x4e   : > { %p1036_p2 = por %p1035_p9, %p1034_p13 }
  0x50   : > { %p1037_p1 = pnand %p1036_p2, %p1030_p5 }
  0x52   : > { %1040 = shalt.err (!%p1037_p1)
}
  0x53   : > { %s1041_s25 = scalar_lea.vmem %s1312_s23, 256  ;;  %s1132_s9 = smov [#allocation2]  }
  0x54   : > { %p1042_p6 = scmp.ne.s32.totalorder %s1312_s23, %s1041_s25  ;;  %s1046_s24 = sshll.u32 %s1132_s9, 4  ;;  %s1047_s24 = int_to_ptr.vmem [resolvable:$false] %s1046_s24 }
  0x55   : > { %s1048_s10 = scalar_lea.vmem %s1047_s24, 512  ;;  %p1049_p3 = scmp.lt.s32.totalorder %s1312_s23, %s1047_s24 }
  0x56   : > { %p1044_p8 = pnand %p1042_p6, %p1028_p0  ;;  %p1050_p7 = scmp.lt.s32.totalorder %s1048_s10, %s1041_s25 }
  0x58   : > { %p1045_p12 = pneg %p1044_p8  ;;  %p1051_p10 = por %p1050_p7, %p1049_p3 }
  0x5a   : > { %p1052_p13 = pnand %p1051_p10, %p1045_p12 }
  0x5c   : > { %1055 = shalt.err (!%p1052_p13)
}
  0x5d   : > { %889 = dma.hbm_to_vmem [thread:$0]  (!%p1314_p11), %s1310_s17, 256, %s1312_s23, %s157_s22  }
  0x5e   : > { %p1660_p5 = scmp.ne.s32.totalorder %s1655_s20, 0 }
  0x5f   : > { %s1346_s11 = sand.u32 (!%p1660_p5), 1, %s1118_s13   ;;  %p1661_p0 = scmp.ne.s32.totalorder (!%p1660_p5), %s1653_s18, 0 }
  0x60   : > { %177 = sbr.rel (%p1660_p5) target bundleno = 782 (0x30e), region = 32  ;;  %s854_s21 = sshll.u32 (!%p1660_p5), %s1346_s11, 4 }
  0x61   : > { %s180_s27 = scalar_lea.sflag (!%p1660_p5), [#allocation3], %s1346_s11  ;;  %s183_s28 = scalar_lea.vmem (!%p1660_p5), [#allocation2], %s854_s21 }
  0x67   : > { %1101 = dma.done.wait (%p1661_p0), %s180_s27, 256  }
  0x68   : > { %1103 = vsyncadd (%p1661_p0), %s180_s27, 4294967040  ;;  %p1662_p11 = scmp.eq.s32.totalorder %s1205_s16, 0 }
  0x6a   : > { %1105 = dma.done.wait (%p1662_p11), [#allocation6], 6528   ;;  %p1663_p9 = pmov %p1662_p11 }
  0x6b   : > { %v1133_v0 = vmov 0.0   ;;  %v233_v1 = vld [vmem:[%s183_s28 + $0x8] sm:$0xff]  ;;  %v232_v2 = vld [vmem:[%s183_s28] sm:$0xff]  ;;  %vm234_vm0 = vcmask 64512   ;;  %v1134_v4 = vmov 16   ;;  %s1135_s18 = smov 33   ;;  %v314_v28 = vlaneseq }
  0x6c   : > { %1107 = vsyncadd (%p1663_p9), [#allocation6], 4294960768  ;;  %301 = vmatprep.mubr.f32.mxu0 %v1133_v0  ;;  %726 = vmatprep.mubr.f32.mxu1 %v1133_v0  ;;  %v1360_v3 = vld [vmem:[#allocation5] sm:$0xff]  ;;  %s1136_s20 = smov 34   ;;  %s1137_s17 = smov 95   ;;  %v1159_v7 = vmov 17  }
  0x6d   : > { %237 = vmatprep.subr.mxu0 %v233_v1  ;;  %966 = vset.pattern.permute.xlu0 %v1134_v4  ;;  %s1138_s23 = smov 32   ;;  %s1139_s26 = smov 94   ;;  %v1161_v8 = vmov 19   ;;  %v1162_v9 = vmov 18   ;;  %v1447_v31 = vand.u32 127, %v314_v28  ;;  %v322_v36 = vld [vmem:[#allocation7 + $0x10] sm:$0xff] }
  0x6e   : > { %238 = vmatpush1.msra.mxu0 %v232_v2  ;;  %s1140_s22 = smov 31   ;;  %s1141_s29 = smov 30   ;;  %968 = vset.pattern.permute.xlu1 %v1162_v9  ;;  %v323_v37 = vld [vmem:[#allocation7 + $0x18] sm:$0xff]  ;;  %v308_v40 = vld [vmem:[#allocation7] sm:$0xff]  ;;  %v309_v41 = vld [vmem:[#allocation7 + $0x8] sm:$0xff] }
  0x6f   : > { %858 = vmatmul.mubr.msk.f32.vlgmr.msra.gmra.mrb[0].mxu0 %vm234_vm0, %v1360_v3  ;;  %s1142_s30 = smov 18   ;;  %s1143_s5 = smov 17   ;;  %vm328_vm1 = vcmp.lt.s32.totalorder %v1447_v31, 33  ;;  %vm342_vm2 = vcmp.lt.s32.totalorder %v1447_v31, 32  ;;  %vm316_vm3 = vcmp.lt.s32.totalorder %v1447_v31, 34  ;;  %vm356_vm4 = vcmp.lt.s32.totalorder %v1447_v31, 31 }
  0x70   : > { %s1144_s6 = smov 16   ;;  %s1145_s25 = smov 15   ;;  %vm370_vm5 = vcmp.lt.s32.totalorder %v1447_v31, 30  ;;  %v336_v44 = vld [vmem:[#allocation7 + $0x20] sm:$0xff]  ;;  %v337_v45 = vld [vmem:[#allocation7 + $0x28] sm:$0xff]  ;;  %v350_v54 = vld [vmem:[#allocation7 + $0x30] sm:$0xff] }
  0x71   : > { %s1146_s9 = smov 14   ;;  %s1147_s24 = smov 2   ;;  %v351_v55 = vld [vmem:[#allocation7 + $0x38] sm:$0xff]  ;;  %vm384_vm6 = vcmp.lt.s32.totalorder %v1447_v31, 18  ;;  %v364_v0 = vld [vmem:[#allocation7 + $0x40] sm:$0xff]  ;;  %v365_v1 = vld [vmem:[#allocation7 + $0x48] sm:$0xff] }
  0x72   : > { %s1148_s10 = smov 1   ;;  %s1149_s27 = smov 127   ;;  %vm398_vm7 = vcmp.lt.s32.totalorder %v1447_v31, 17  ;;  %vm412_vm8 = vcmp.lt.s32.totalorder %v1447_v31, 16  ;;  %vm426_vm9 = vcmp.lt.s32.totalorder %v1447_v31, 15  ;;  %vm440_vm10 = vcmp.lt.s32.totalorder %v1447_v31, 14 }
  0x73   : > { %s1150_s28 = smov 126   ;;  %vm454_vm11 = vcmp.lt.s32.totalorder %v1447_v31, 2  ;;  %vm468_vm12 = vcmp.lt.s32.totalorder %v1447_v31, 1  ;;  %vm489_vm13 = vcmp.lt.s32.totalorder %v1447_v31, 127  ;;  %vm503_vm14 = vcmp.lt.s32.totalorder %v1447_v31, 126 }
  0x74   : > { %vm517_vm15 = vcmp.lt.s32.totalorder %v1447_v31, 114 }
 0x142   : > { %v1364_v5 = vpop.f32.mrb[0].mxu0 }
 0x143   : > { %324 = vrot.lane.b32.xlu1 %v1364_v5, %s1135_s18  ;;  %310 = vrot.lane.b32.xlu0 %v1364_v5, %s1136_s20  ;;  %v1369_v6 = vpop.f32.mrb[1].mxu0 }
 0x147   : > { %625 = vrot.lane.b32.xlu1 %v1364_v5, %s1137_s17  ;;  %338 = vrot.lane.b32.xlu0 %v1364_v5, %s1138_s23 }
 0x14b   : > { %639 = vrot.lane.b32.xlu1 %v1364_v5, %s1139_s26  ;;  %352 = vrot.lane.b32.xlu0 %v1364_v5, %s1140_s22 }
 0x14f   : > { %366 = vrot.lane.b32.xlu0 %v1364_v5, %s1141_s29  ;;  %326 = vrot.lane.b32.xlu1 %v1369_v6, %s1135_s18  ;;  %s1151_s18 = smov 114  }
 0x153   : > { %380 = vrot.lane.b32.xlu0 %v1364_v5, %s1142_s30  ;;  %340 = vrot.lane.b32.xlu1 %v1369_v6, %s1138_s23  ;;  %s1152_s23 = smov 113  }
 0x157   : > { %394 = vrot.lane.b32.xlu0 %v1364_v5, %s1143_s5  ;;  %354 = vrot.lane.b32.xlu1 %v1369_v6, %s1140_s22  ;;  %s1153_s22 = smov 112  }
 0x15b   : > { %408 = vrot.lane.b32.xlu0 %v1364_v5, %s1144_s6  ;;  %368 = vrot.lane.b32.xlu1 %v1369_v6, %s1141_s29  ;;  %s1155_s29 = smov 110  }
 0x15f   : > { %422 = vrot.lane.b32.xlu0 %v1364_v5, %s1145_s25  ;;  %382 = vrot.lane.b32.xlu1 %v1369_v6, %s1142_s30  ;;  %s1156_s30 = smov 98  }
 0x163   : > { %436 = vrot.lane.b32.xlu0 %v1364_v5, %s1146_s9  ;;  %396 = vrot.lane.b32.xlu1 %v1369_v6, %s1143_s5  ;;  %s1157_s5 = smov 97  }
 0x167   : > { %450 = vrot.lane.b32.xlu0 %v1364_v5, %s1147_s24  ;;  %410 = vrot.lane.b32.xlu1 %v1369_v6, %s1144_s6  ;;  %s1158_s6 = smov 96  }
 0x16b   : > { %464 = vrot.lane.b32.xlu0 %v1364_v5, %s1148_s10  ;;  %424 = vrot.lane.b32.xlu1 %v1369_v6, %s1145_s25  ;;  %s1160_s25 = smov 120  }
 0x16f   : > { %485 = vrot.lane.b32.xlu0 %v1364_v5, %s1149_s27  ;;  %438 = vrot.lane.b32.xlu1 %v1369_v6, %s1146_s9 }
 0x173   : > { %452 = vrot.lane.b32.xlu1 %v1369_v6, %s1147_s24  ;;  %312 = vrot.lane.b32.xlu0 %v1369_v6, %s1136_s20  ;;  %s1154_s20 = smov 111  }
 0x177   : > { %466 = vrot.lane.b32.xlu1 %v1369_v6, %s1148_s10  ;;  %499 = vrot.lane.b32.xlu0 %v1364_v5, %s1150_s28 }
 0x17b   : > { %487 = vrot.lane.b32.xlu1 %v1369_v6, %s1149_s27  ;;  %513 = vrot.lane.b32.xlu0 %v1364_v5, %s1151_s18 }
 0x17f   : > { %501 = vrot.lane.b32.xlu1 %v1369_v6, %s1150_s28  ;;  %527 = vrot.lane.b32.xlu0 %v1364_v5, %s1152_s23  ;;  %s1163_s28 = smov [#allocation8]  }
 0x183   : > { %515 = vrot.lane.b32.xlu1 %v1369_v6, %s1151_s18  ;;  %541 = vrot.lane.b32.xlu0 %v1364_v5, %s1153_s22  ;;  %s1060_s18 = sshll.u32 %s1163_s28, 4  ;;  %s1061_s18 = int_to_ptr.vmem [resolvable:$false] %s1060_s18 }
 0x187   : > { %529 = vrot.lane.b32.xlu1 %v1369_v6, %s1152_s23  ;;  %555 = vrot.lane.b32.xlu0 %v1364_v5, %s1154_s20  ;;  %s1062_s23 = scalar_lea.vmem %s1061_s18, 512 }
 0x18b   : > { %543 = vrot.lane.b32.xlu1 %v1369_v6, %s1153_s22  ;;  %569 = vrot.lane.b32.xlu0 %v1364_v5, %s1155_s29 }
 0x18f   : > { %557 = vrot.lane.b32.xlu1 %v1369_v6, %s1154_s20  ;;  %583 = vrot.lane.b32.xlu0 %v1364_v5, %s1156_s30 }
 0x193   : > { %571 = vrot.lane.b32.xlu1 %v1369_v6, %s1155_s29  ;;  %597 = vrot.lane.b32.xlu0 %v1364_v5, %s1157_s5 }
 0x197   : > { %585 = vrot.lane.b32.xlu1 %v1369_v6, %s1156_s30  ;;  %611 = vrot.lane.b32.xlu0 %v1364_v5, %s1158_s6 }
 0x19b   : > { %599 = vrot.lane.b32.xlu1 %v1369_v6, %s1157_s5  ;;  %217 = vperm.xlu0 %966, %v1360_v3  }
 0x19f   : > { %613 = vrot.lane.b32.xlu1 %v1369_v6, %s1158_s6  ;;  %967 = vset.pattern.permute.xlu0 %v1159_v7 }
 0x1a0   : > { %221 = vperm.xlu0 %967, %v1360_v3  }
 0x1a3   : > { %627 = vrot.lane.b32.xlu1 %v1369_v6, %s1137_s17  ;;  %s866_s17 = sshll.u32 %s1205_s16, 8  ;;  %s742_s16 = scalar_lea.sflag [#allocation4], %s1346_s11 }
 0x1a4   : > { %658 = vrot.lane.b32.xlu0 %v1360_v3, %s1160_s25  ;;  %s1602_s27 = scalar_lea.hbm %s1649_s3, %s866_s17 }
 0x1a5   : > { %969 = vset.pattern.permute.xlu0 %v1161_v8 }
 0x1a7   : > { %641 = vrot.lane.b32.xlu1 %v1369_v6, %s1139_s26  ;;  %s213_s26 = scalar_lea.vmem [#allocation8], %s854_s21 }
 0x1a8   : > { %229 = vperm.xlu0 %969, %v1360_v3   ;;  %s756_s9 = sshll.u32 %s213_s26, 4  ;;  %s1604_s9 = int_to_ptr.vmem [resolvable:$true] %s756_s9 }
 0x1a9   : > { %s1056_s21 = scalar_lea.vmem %s1604_s9, 256  ;;  %p1063_p8 = scmp.lt.s32.totalorder %s1604_s9, %s1061_s18 }
 0x1aa   : > { %p1057_p2 = scmp.ne.s32.totalorder %s1604_s9, %s1056_s21  ;;  %p1064_p12 = scmp.lt.s32.totalorder %s1062_s23, %s1056_s21 }
 0x1ab   : > { %225 = vperm.xlu1 %968, %v1360_v3  }
 0x1ac   : > { %p1058_p1 = pnand %p1057_p2, %p1297_p4  ;;  %p1065_p3 = por %p1064_p12, %p1063_p8 }
 0x1ae   : > { %p1059_p6 = pneg %p1058_p1 }
 0x1b0   : > { %p1066_p7 = pnand %p1065_p3, %p1059_p6 }
 0x1b5   : > { %v325_v10 = vpop.permute.xlu1 %324  ;;  %v311_v11 = vpop.permute.xlu0 %310 }
 0x1b9   : > { %v1427_v12 = vpop.permute.xlu1 %625  ;;  %v339_v13 = vpop.permute.xlu0 %338 }
 0x1bd   : > { %v1429_v14 = vpop.permute.xlu1 %639  ;;  %v353_v15 = vpop.permute.xlu0 %352 }
 0x1c1   : > { %v367_v16 = vpop.permute.xlu0 %366  ;;  %v327_v17 = vpop.permute.xlu1 %326 }
 0x1c2   : > { %v329_v38 = vsel %vm328_vm1, %v325_v10, %v327_v17  ;;  %v330_v39 = vsel %vm328_vm1, %v327_v17, %v325_v10  ;;  %v378_v10 = vld [vmem:[#allocation7 + $0x50] sm:$0xff]  ;;  %vm531_vm1 = vcmp.lt.s32.totalorder %v1447_v31, 113 }
 0x1c3   : > { %v331_v50 = vmul.f32 %v330_v39, %v322_v36  ;;  %v332_v51 = vmul.f32 %v329_v38, %v323_v37  ;;  %v392_v36 = vld [vmem:[#allocation7 + $0x60] sm:$0xff]  ;;  %v393_v37 = vld [vmem:[#allocation7 + $0x68] sm:$0xff] }
 0x1c5   : > { %v1431_v18 = vpop.permute.xlu0 %380  ;;  %v341_v19 = vpop.permute.xlu1 %340 }
 0x1c6   : > { %v343_v46 = vsel %vm342_vm2, %v339_v13, %v341_v19  ;;  %v344_v47 = vsel %vm342_vm2, %v341_v19, %v339_v13  ;;  %vm545_vm2 = vcmp.lt.s32.totalorder %v1447_v31, 112 }
 0x1c7   : > { %v345_v58 = vmul.f32 %v344_v47, %v336_v44  ;;  %v346_v59 = vmul.f32 %v343_v46, %v337_v45  ;;  %v407_v44 = vld [vmem:[#allocation7 + $0x78] sm:$0xff] }
 0x1c9   : > { %v1433_v20 = vpop.permute.xlu0 %394  ;;  %v355_v21 = vpop.permute.xlu1 %354 }
 0x1ca   : > { %v357_v56 = vsel %vm356_vm4, %v353_v15, %v355_v21  ;;  %v358_v57 = vsel %vm356_vm4, %v355_v21, %v353_v15  ;;  %vm573_vm4 = vcmp.lt.s32.totalorder %v1447_v31, 110 }
 0x1cb   : > { %v359_v4 = vmul.f32 %v358_v57, %v350_v54  ;;  %v360_v7 = vmul.f32 %v357_v56, %v351_v55  ;;  %v434_v57 = vld [vmem:[#allocation7 + $0x90] sm:$0xff] }
 0x1cd   : > { %v1435_v22 = vpop.permute.xlu0 %408  ;;  %v369_v23 = vpop.permute.xlu1 %368 }
 0x1ce   : > { %v371_v2 = vsel %vm370_vm5, %v367_v16, %v369_v23  ;;  %v372_v3 = vsel %vm370_vm5, %v369_v23, %v367_v16  ;;  %vm587_vm5 = vcmp.lt.s32.totalorder %v1447_v31, 98 }
 0x1cf   : > { %v373_v17 = vmul.f32 %v372_v3, %v364_v0  ;;  %v374_v16 = vmul.f32 %v371_v2, %v365_v1  ;;  %v448_v3 = vld [vmem:[#allocation7 + $0xa0] sm:$0xff] }
 0x1d1   : > { %v1437_v24 = vpop.permute.xlu0 %422  ;;  %v383_v25 = vpop.permute.xlu1 %382 }
 0x1d2   : > { %v385_v13 = vsel %vm384_vm6, %v1431_v18, %v383_v25  ;;  %v386_v15 = vsel %vm384_vm6, %v383_v25, %v1431_v18  ;;  %vm601_vm6 = vcmp.lt.s32.totalorder %v1447_v31, 97 }
 0x1d3   : > { %v387_v25 = vmul.f32 %v386_v15, %v378_v10 }
 0x1d5   : > { %v1439_v26 = vpop.permute.xlu0 %436  ;;  %v1441_v27 = vpop.permute.xlu1 %396 }
 0x1d6   : > { %v399_v38 = vsel %vm398_vm7, %v1433_v20, %v1441_v27  ;;  %v400_v18 = vsel %vm398_vm7, %v1441_v27, %v1433_v20  ;;  %vm615_vm7 = vcmp.lt.s32.totalorder %v1447_v31, 96 }
 0x1d7   : > { %v401_v20 = vmul.f32 %v400_v18, %v392_v36  ;;  %v402_v27 = vmul.f32 %v399_v38, %v393_v37  ;;  %v477_v38 = vld [vmem:[#allocation7 + $0xc8] sm:$0xff] }
 0x1d9   : > { %v1443_v29 = vpop.permute.xlu0 %450  ;;  %v1445_v30 = vpop.permute.xlu1 %410 }
 0x1da   : > { %v413_v45 = vsel %vm412_vm8, %v1435_v22, %v1445_v30  ;;  %v414_v46 = vsel %vm412_vm8, %v1445_v30, %v1435_v22  ;;  %vm629_vm8 = vcmp.lt.s32.totalorder %v1447_v31, 95 }
 0x1db   : > { %v416_v54 = vmul.f32 %v413_v45, %v407_v44 }
 0x1dd   : > { %v1449_v32 = vpop.permute.xlu0 %464  ;;  %v1451_v33 = vpop.permute.xlu1 %424 }
 0x1de   : > { %v428_v22 = vsel %vm426_vm9, %v1451_v33, %v1437_v24 }
 0x1e1   : > { %v1454_v34 = vpop.permute.xlu0 %485  ;;  %v1456_v35 = vpop.permute.xlu1 %438 }
 0x1e5   : > { %v1462_v42 = vpop.permute.xlu1 %452  ;;  %v313_v43 = vpop.permute.xlu0 %312 }
 0x1e6   : > { %v317_v48 = vsel %vm316_vm3, %v311_v11, %v313_v43  ;;  %v318_v49 = vsel %vm316_vm3, %v313_v43, %v311_v11  ;;  %v379_v11 = vld [vmem:[#allocation7 + $0x58] sm:$0xff]  ;;  %v406_v43 = vld [vmem:[#allocation7 + $0x70] sm:$0xff]  ;;  %vm559_vm3 = vcmp.lt.s32.totalorder %v1447_v31, 111 }
 0x1e7   : > { %v319_v52 = vmul.f32 %v318_v49, %v308_v40  ;;  %v320_v53 = vmul.f32 %v317_v48, %v309_v41  ;;  %v388_v39 = vmul.f32 %v385_v13, %v379_v11  ;;  %v415_v30 = vmul.f32 %v414_v46, %v406_v43  ;;  %v462_v11 = vld [vmem:[#allocation7 + $0xb0] sm:$0xff]  ;;  %v463_v13 = vld [vmem:[#allocation7 + $0xb8] sm:$0xff] }
 0x1e8   : > { %v483_v43 = vld [vmem:[#allocation7 + $0xd0] sm:$0xff] }
 0x1e9   : > { %v333_v60 = vadd.f32 %v331_v50, %v319_v52  ;;  %v334_v61 = vadd.f32 %v332_v51, %v320_v53  ;;  %v1469_v62 = vpop.permute.xlu1 %466  ;;  %v1471_v63 = vpop.permute.xlu0 %499  ;;  %v420_v51 = vld [vmem:[#allocation7 + $0x80] sm:$0xff]  ;;  %v421_v52 = vld [vmem:[#allocation7 + $0x88] sm:$0xff]  ;;  %v427_v53 = vsel %vm426_vm9, %v1437_v24, %v1451_v33  ;;  %vm643_vm9 = vcmp.lt.s32.totalorder %v1447_v31, 94 }
 0x1ea   : > { %v429_v24 = vmul.f32 %v428_v22, %v420_v51  ;;  %v430_v33 = vmul.f32 %v427_v53, %v421_v52  ;;  %v469_v15 = vsel %vm468_vm12, %v1449_v32, %v1469_v62  ;;  %v511_v22 = vld [vmem:[#allocation7 + $0xf0] sm:$0xff] }
 0x1eb   : > { %v347_v8 = vadd.f32 %v345_v58, %v333_v60  ;;  %v348_v9 = vadd.f32 %v346_v59, %v334_v61  ;;  %v435_v58 = vld [vmem:[#allocation7 + $0x98] sm:$0xff]  ;;  %v441_v59 = vsel %vm440_vm10, %v1439_v26, %v1456_v35  ;;  %v442_v60 = vsel %vm440_vm10, %v1456_v35, %v1439_v26 }
 0x1ec   : > { %v456_v26 = vsel %vm454_vm11, %v1462_v42, %v1443_v29  ;;  %v443_v35 = vmul.f32 %v442_v60, %v434_v57  ;;  %v526_v60 = vld [vmem:[#allocation7 + $0x108] sm:$0xff] }
 0x1ed   : > { %v361_v19 = vadd.f32 %v359_v4, %v347_v8  ;;  %v362_v21 = vadd.f32 %v360_v7, %v348_v9  ;;  %v1485_v23 = vpop.permute.xlu1 %487  ;;  %v1487_v28 = vpop.permute.xlu0 %513  ;;  %v449_v4 = vld [vmem:[#allocation7 + $0xa8] sm:$0xff]  ;;  %v455_v7 = vsel %vm454_vm11, %v1443_v29, %v1462_v42  ;;  %v444_v8 = vmul.f32 %v441_v59, %v435_v58 }
 0x1ee   : > { %v458_v29 = vmul.f32 %v455_v7, %v449_v4  ;;  %v491_v44 = vsel %vm489_vm13, %v1485_v23, %v1454_v34  ;;  %v540_v4 = vld [vmem:[#allocation7 + $0x118] sm:$0xff] }
 0x1ef   : > { %v375_v40 = vadd.f32 %v373_v17, %v361_v19  ;;  %v376_v41 = vadd.f32 %v374_v16, %v362_v21  ;;  %v470_v17 = vsel %vm468_vm12, %v1469_v62, %v1449_v32  ;;  %v457_v16 = vmul.f32 %v456_v26, %v448_v3  ;;  %v476_v21 = vld [vmem:[#allocation7 + $0xc0] sm:$0xff]  ;;  %v484_v32 = vld [vmem:[#allocation7 + $0xd8] sm:$0xff]  ;;  %v539_v3 = vld [vmem:[#allocation7 + $0x110] sm:$0xff] }
 0x1f0   : > { %v490_v62 = vsel %vm489_vm13, %v1454_v34, %v1485_v23  ;;  %v493_v53 = vmul.f32 %v491_v44, %v484_v32 }
 0x1f1   : > { %v389_v47 = vadd.f32 %v387_v25, %v375_v40  ;;  %v390_v48 = vadd.f32 %v388_v39, %v376_v41  ;;  %v502_v49 = vpop.permute.xlu1 %501  ;;  %v1507_v50 = vpop.permute.xlu0 %527  ;;  %v471_v39 = vmul.f32 %v470_v17, %v462_v11  ;;  %v472_v40 = vmul.f32 %v469_v15, %v463_v13  ;;  %v553_v13 = vld [vmem:[#allocation7 + $0x120] sm:$0xff]  ;;  %v554_v15 = vld [vmem:[#allocation7 + $0x128] sm:$0xff] }
 0x1f2   : > { %v478_v41 = vmul.f32 %v476_v21, %v1364_v5  ;;  %v497_v5 = vld [vmem:[#allocation7 + $0xe0] sm:$0xff]  ;;  %v505_v51 = vsel %vm503_vm14, %v502_v49, %v1471_v63  ;;  %v492_v52 = vmul.f32 %v490_v62, %v483_v43 }
 0x1f3   : > { %v403_v55 = vadd.f32 %v401_v20, %v389_v47  ;;  %v404_v56 = vadd.f32 %v402_v27, %v390_v48  ;;  %v479_v20 = vmul.f32 %v477_v38, %v1369_v6  ;;  %v498_v47 = vld [vmem:[#allocation7 + $0xe8] sm:$0xff]  ;;  %v504_v48 = vsel %vm503_vm14, %v1471_v63, %v502_v49  ;;  %v525_v49 = vld [vmem:[#allocation7 + $0x100] sm:$0xff] }
 0x1f4   : > { %v506_v58 = vmul.f32 %v504_v48, %v497_v5  ;;  %v507_v59 = vmul.f32 %v505_v51, %v498_v47 }
 0x1f5   : > { %v417_v61 = vadd.f32 %v415_v30, %v403_v55  ;;  %v418_v0 = vadd.f32 %v416_v54, %v404_v56  ;;  %v516_v1 = vpop.permute.xlu1 %515  ;;  %v1527_v2 = vpop.permute.xlu0 %541  ;;  %v512_v30 = vld [vmem:[#allocation7 + $0xf8] sm:$0xff] }
 0x1f6   : > { %v518_v54 = vsel %vm517_vm15, %v1487_v28, %v516_v1  ;;  %v519_v55 = vsel %vm517_vm15, %v516_v1, %v1487_v28 }
 0x1f7   : > { %v431_v9 = vadd.f32 %v429_v24, %v417_v61  ;;  %v432_v10 = vadd.f32 %v430_v33, %v418_v0  ;;  %v520_v0 = vmul.f32 %v518_v54, %v511_v22  ;;  %v521_v1 = vmul.f32 %v519_v55, %v512_v30  ;;  %v609_v55 = vld [vmem:[#allocation7 + $0x160] sm:$0xff] }
 0x1f9   : > { %v445_v42 = vadd.f32 %v443_v35, %v431_v9  ;;  %v446_v19 = vadd.f32 %v444_v8, %v432_v10  ;;  %v530_v36 = vpop.permute.xlu1 %529  ;;  %v556_v37 = vpop.permute.xlu0 %555 }
 0x1fa   : > { %v532_v24 = vsel %vm531_vm1, %v1507_v50, %v530_v36  ;;  %v533_v33 = vsel %vm531_vm1, %v530_v36, %v1507_v50 }
 0x1fb   : > { %v459_v18 = vadd.f32 %v457_v16, %v445_v42  ;;  %v460_v25 = vadd.f32 %v458_v29, %v446_v19  ;;  %v534_v9 = vmul.f32 %v532_v24, %v525_v49  ;;  %v535_v50 = vmul.f32 %v533_v33, %v526_v60  ;;  %v623_v24 = vld [vmem:[#allocation7 + $0x170] sm:$0xff]  ;;  %v624_v33 = vld [vmem:[#allocation7 + $0x178] sm:$0xff] }
 0x1fd   : > { %v473_v45 = vadd.f32 %v471_v39, %v459_v18  ;;  %v474_v46 = vadd.f32 %v472_v40, %v460_v25  ;;  %v544_v27 = vpop.permute.xlu1 %543  ;;  %v570_v6 = vpop.permute.xlu0 %569  ;;  %v567_v39 = vld [vmem:[#allocation7 + $0x130] sm:$0xff]  ;;  %v568_v40 = vld [vmem:[#allocation7 + $0x138] sm:$0xff] }
 0x1fe   : > { %v546_v7 = vsel %vm545_vm2, %v1527_v2, %v544_v27  ;;  %v547_v26 = vsel %vm545_vm2, %v544_v27, %v1527_v2  ;;  %v582_v27 = vld [vmem:[#allocation7 + $0x148] sm:$0xff] }
 0x1ff   : > { %v480_v34 = vadd.f32 %v478_v41, %v473_v45  ;;  %v481_v23 = vadd.f32 %v479_v20, %v474_v46  ;;  %v548_v19 = vmul.f32 %v546_v7, %v539_v3  ;;  %v549_v2 = vmul.f32 %v547_v26, %v540_v4  ;;  %v581_v20 = vld [vmem:[#allocation7 + $0x140] sm:$0xff] }
 0x201   : > { %v494_v56 = vadd.f32 %v492_v52, %v480_v34  ;;  %v495_v57 = vadd.f32 %v493_v53, %v481_v23  ;;  %v558_v63 = vpop.permute.xlu1 %557  ;;  %v584_v10 = vpop.permute.xlu0 %583  ;;  %v595_v34 = vld [vmem:[#allocation7 + $0x150] sm:$0xff]  ;;  %v596_v23 = vld [vmem:[#allocation7 + $0x158] sm:$0xff] }
 0x202   : > { %v560_v17 = vsel %vm559_vm3, %v556_v37, %v558_v63  ;;  %v561_v16 = vsel %vm559_vm3, %v558_v63, %v556_v37 }
 0x203   : > { %v508_v28 = vadd.f32 %v506_v58, %v494_v56  ;;  %v509_v61 = vadd.f32 %v507_v59, %v495_v57  ;;  %v562_v38 = vmul.f32 %v560_v17, %v553_v13  ;;  %v563_v18 = vmul.f32 %v561_v16, %v554_v15  ;;  %v610_v56 = vld [vmem:[#allocation7 + $0x168] sm:$0xff] }
 0x205   : > { %v522_v35 = vadd.f32 %v520_v0, %v508_v28  ;;  %v523_v8 = vadd.f32 %v521_v1, %v509_v61  ;;  %v572_v11 = vpop.permute.xlu1 %571  ;;  %v598_v44 = vpop.permute.xlu0 %597 }
 0x206   : > { %v574_v41 = vsel %vm573_vm4, %v570_v6, %v572_v11  ;;  %v575_v43 = vsel %vm573_vm4, %v572_v11, %v570_v6 }
 0x207   : > { %v536_v29 = vadd.f32 %v534_v9, %v522_v35  ;;  %v537_v42 = vadd.f32 %v535_v50, %v523_v8  ;;  %v576_v37 = vmul.f32 %v574_v41, %v567_v39  ;;  %v577_v45 = vmul.f32 %v575_v43, %v568_v40  ;;  %v637_v8 = vld [vmem:[#allocation7 + $0x180] sm:$0xff]  ;;  %v638_v9 = vld [vmem:[#allocation7 + $0x188] sm:$0xff] }
 0x209   : > { %v550_v21 = vadd.f32 %v548_v19, %v536_v29  ;;  %v551_v36 = vadd.f32 %v549_v2, %v537_v42  ;;  %v586_v25 = vpop.permute.xlu1 %585  ;;  %v612_v30 = vpop.permute.xlu0 %611 }
 0x20a   : > { %v588_v5 = vsel %vm587_vm5, %v584_v10, %v586_v25  ;;  %v589_v47 = vsel %vm587_vm5, %v586_v25, %v584_v10 }
 0x20b   : > { %v564_v32 = vadd.f32 %v562_v38, %v550_v21  ;;  %v565_v62 = vadd.f32 %v563_v18, %v551_v36  ;;  %v590_v6 = vmul.f32 %v588_v5, %v581_v20  ;;  %v591_v22 = vmul.f32 %v589_v47, %v582_v27 }
 0x20d   : > { %v600_v46 = vpop.permute.xlu1 %599  ;;  %v578_v48 = vadd.f32 %v576_v37, %v564_v32  ;;  %v579_v51 = vadd.f32 %v577_v45, %v565_v62 }
 0x20e   : > { %v602_v52 = vsel %vm601_vm6, %v598_v44, %v600_v46  ;;  %v603_v53 = vsel %vm601_vm6, %v600_v46, %v598_v44 }
 0x20f   : > { %v592_v59 = vadd.f32 %v590_v6, %v578_v48  ;;  %v593_v63 = vadd.f32 %v591_v22, %v579_v51  ;;  %v604_v49 = vmul.f32 %v602_v52, %v595_v34  ;;  %v605_v60 = vmul.f32 %v603_v53, %v596_v23 }
 0x211   : > { %v614_v54 = vpop.permute.xlu1 %613  ;;  %v606_v4 = vadd.f32 %v604_v49, %v592_v59  ;;  %v607_v7 = vadd.f32 %v605_v60, %v593_v63 }
 0x212   : > { %v616_v57 = vsel %vm615_vm7, %v612_v30, %v614_v54  ;;  %v617_v58 = vsel %vm615_vm7, %v614_v54, %v612_v30 }
 0x213   : > { %v618_v28 = vmul.f32 %v616_v57, %v609_v55  ;;  %v619_v61 = vmul.f32 %v617_v58, %v610_v56 }
 0x215   : > { %v628_v0 = vpop.permute.xlu1 %627  ;;  %v620_v50 = vadd.f32 %v618_v28, %v606_v4  ;;  %v621_v10 = vadd.f32 %v619_v61, %v607_v7 }
 0x216   : > { %v630_v1 = vsel %vm629_vm8, %v1427_v12, %v628_v0  ;;  %v631_v3 = vsel %vm629_vm8, %v628_v0, %v1427_v12 }
 0x217   : > { %v632_v26 = vmul.f32 %v630_v1, %v623_v24  ;;  %v633_v35 = vmul.f32 %v631_v3, %v624_v33 }
 0x219   : > { %v642_v11 = vpop.permute.xlu1 %641  ;;  %v634_v16 = vadd.f32 %v632_v26, %v620_v50  ;;  %v635_v29 = vadd.f32 %v633_v35, %v621_v10 }
 0x21a   : > { %v644_v13 = vsel %vm643_vm9, %v1429_v14, %v642_v11  ;;  %v645_v15 = vsel %vm643_vm9, %v642_v11, %v1429_v14  ;;  %v218_v17 = vpop.permute.xlu0 %217 }
 0x21b   : > { %v646_v42 = vmul.f32 %v644_v13, %v637_v8  ;;  %v647_v12 = vmul.f32 %v645_v15, %v638_v9 }
 0x21d   : > { %v648_v19 = vadd.f32 %v646_v42, %v634_v16  ;;  %v649_v31 = vadd.f32 %v647_v12, %v635_v29 }
 0x21f   : > { %v650_v2 = vadd.f32 %v648_v19, %v218_v17  ;;  %v651_v21 = vadd.f32 %v649_v31, %v218_v17  ;;  %v222_v36 = vpop.permute.xlu0 %221 }
 0x221   : > { %v654_v38 = vmul.f32 %v650_v2, %v222_v36  ;;  %v655_v18 = vmul.f32 %v651_v21, %v222_v36  ;;  %vm653_vm10 = vcmp.ge.f32.partialorder %v651_v21, 0.0  ;;  %vm652_vm11 = vcmp.ge.f32.partialorder %v650_v2, 0.0 }
 0x223   : > { %v657_v25 = vsel %vm653_vm10, %v651_v21, %v655_v18  ;;  %v659_v39 = vpop.permute.xlu0 %658  ;;  %v656_v40 = vsel %vm652_vm11, %v650_v2, %v654_v38 }
 0x224   : > { %662 = vmatprep.subr.mxu1 %v657_v25 }
 0x225   : > { %663 = vmatpush1.msra.mxu1 %v656_v40 }
 0x226   : > { %859 = vmatmul.mubr.msk.f32.vlgmr.msra.gmra.mrb[0].mxu1 %vm234_vm0, %v659_v39 }
 0x227   : > { %v230_v43 = vpop.permute.xlu0 %229 }
 0x22a   : > { %v226_v14 = vpop.permute.xlu1 %225 }
 0x2f9   : > { %v728_v41 = vpop.f32.mrb[0].mxu1 }
 0x2fa   : > { %v729_v32 = vadd.f32 %v728_v41, %v226_v14  ;;  %v730_v62 = vpop.f32.mrb[1].mxu1 }
 0x2fb   : > { %v731_v44 = vadd.f32 %v730_v62, %v226_v14 }
 0x2fc   : > { %vm733_vm12 = vcmp.ge.f32.partialorder %v729_v32, 0.0  ;;  %v735_v37 = vmul.f32 %v729_v32, %v230_v43 }
 0x2fd   : > { %vm734_vm13 = vcmp.ge.f32.partialorder %v731_v44, 0.0  ;;  %v736_v45 = vmul.f32 %v731_v44, %v230_v43 }
 0x2fe   : > { %v737_v46 = vsel %vm733_vm12, %v729_v32, %v735_v37 }
 0x2ff   : > { %v738_v20 = vsel %vm734_vm13, %v731_v44, %v736_v45  ;;  %739 = vst [vmem:[%s213_s26] sm:$0xff] %v737_v46 }
 0x300   : > { %740 = vst [vmem:[%s213_s26 + $0x8] sm:$0xff] %v738_v20 }
 0x301   : > { %1069 = shalt.err (!%p1066_p7)
}
 0x302   : > { %s1070_s11 = scalar_lea.hbm %s1602_s27, 256  ;;  %s1074_s29 = scalar_lea.hbm %s1649_s3, 512 }
 0x303   : > { %p1071_p10 = scmp.ne.s32.totalorder %s1602_s27, %s1070_s11  ;;  %p1075_p0 = scmp.lt.u32.totalorder %s1602_s27, %s1649_s3 }
 0x304   : > { %p1076_p11 = scmp.lt.u32.totalorder %s1074_s29, %s1070_s11  ;;  %p1078_p2 = scmp.lt.u32.totalorder %s1070_s11, %s1602_s27 }
 0x305   : > { %p1072_p13 = pnand %p1071_p10, %p1297_p4 }
 0x306   : > { %p1077_p9 = por %p1076_p11, %p1075_p0 }
 0x307   : > { %p1073_p5 = pneg %p1072_p13 }
 0x308   : > { %p1079_p1 = por %p1078_p2, %p1077_p9 }
 0x30a   : > { %p1080_p6 = pnand %p1079_p1, %p1073_p5 }
 0x30c   : > { %1083 = shalt.err (!%p1080_p6)
}
 0x30d   : > { %877 = dma.vmem_to_hbm [thread:$0]  (%p1297_p4), %s1604_s9, 256, %s1602_s27, %s742_s16  }
 0x30e PF: > { %s768_s6 = sand.u32 1, %s1114_s12   ;;  %p1664_p8 = scmp.ne.s32.totalorder %s1654_s19, 0 }
 0x30f   : > { %p1665_p12 = scmp.ge.s32.totalorder %s1126_s15, 2  ;;  %s769_s25 = scalar_lea.sflag [#allocation4], %s768_s6 }
 0x311   : > { %p891_p3 = pnand %p1665_p12, %p1664_p8 }
 0x313   : > { %1109 = dma.done.wait (!%p891_p3), %s769_s25, 256  }
 0x314   : > { %1111 = vsyncadd (!%p891_p3), %s769_s25, 4294967040  ;;  %p17_p7 = scmp.ge.s32.totalorder %s1287_s4, 4   ;;  %s1666_s12 = smov %s1118_s13 }
 0x315   : > { %s1667_s13 = smov %s1122_s14  ;;  %s1668_s14 = smov %s1303_s8 }
 0x316   : > { %s1669_s15 = smov %s1287_s4  ;;  %19 = sbr.rel (!%p17_p7) target bundleno = 6 (0x6), region = 109 }
 0x31d   :  { %774 = vsyncpa [#allocation3], 1 }
 0x31e   :  { %776 = vsyncpa [#allocation3 + $0x1], 1 }
 0x31f   :  { %777 = vsyncpa [#allocation6], 1 }
 0x320   :  { %778 = vsyncpa [#allocation4], 1 }
 0x321   :  { %780 = vsyncpa [#allocation4 + $0x1], 1 }

</bundles_post_ra>
